<compile_context>
chip_gen: v7x
topology: tpu7x:2x2x1
jax: 0.10.0
libtpu: 0.0.40
codegen_flags: <defaults>
</compile_context>

<pallas_src>
import jax
import jax.numpy as jnp
from jax.experimental import pallas as pl
from jax.experimental.pallas import tpu as pltpu


def mlp_kernel(x_ref, w1_ref, b1_ref, w2_ref, b2_ref, w3_ref, b3_ref,
               out_ref, rep_ref):
    x = x_ref[...]                                                  # (TB, D) f32

    # fc1: (TB, D) @ (D, 64) + (1, 64), ReLU
    h1 = jnp.dot(x, w1_ref[...], preferred_element_type=jnp.float32)
    h1 = jnp.maximum(h1 + b1_ref[...], 0.0)                         # (TB, 64)

    # fc2: (TB, 64) @ (64, 32) + (1, 32), ReLU  -> representation
    h2 = jnp.dot(h1, w2_ref[...], preferred_element_type=jnp.float32)
    rep = jnp.maximum(h2 + b2_ref[...], 0.0)                        # (TB, 32)
    rep_ref[...] = rep.astype(rep_ref.dtype)

    # fc3: N=1 matmul replaced by VPU multiply + lane (XLU) reduction.
    # w3 is stored as (1, 32); b3 is (1, 1).
    out = jnp.sum(rep * w3_ref[...], axis=-1, keepdims=True) + b3_ref[...]
    out_ref[...] = out.astype(out_ref.dtype)                        # (TB, 1)


def _round_up(x, m):
    return pl.cdiv(x, m) * m


def mlp_complexity_forward(x, params, tb=1024):
    """x: (B, input_size) f32.
    params: w1 (D,64), b1 (1,64), w2 (64,32), b2 (1,32), w3 (1,32), b3 (1,1).
    Returns (output (B,1), representation (B,32))."""
    B, D = x.shape

    # Batch tile: multiple of 8, capped at `tb`; pad B up to a multiple of it.
    tile_b = min(tb, _round_up(B, 8))
    b_pad = _round_up(B, tile_b)

    x_p = x
    if b_pad != B:
        x_p = jnp.pad(x_p, ((0, b_pad - B), (0, 0)))

    w1, b1 = params["w1"], params["b1"]
    w2, b2 = params["w2"], params["b2"]
    w3, b3 = params["w3"], params["b3"]

    grid = (b_pad // tile_b,)

    out_pad, rep_pad = pl.pallas_call(
        mlp_kernel,
        out_shape=(
            jax.ShapeDtypeStruct((b_pad, 1), jnp.float32),
            jax.ShapeDtypeStruct((b_pad, 32), jnp.float32),
        ),
        grid=grid,
        in_specs=[
            # x streams through the pipeline, blocked along batch.
            pl.BlockSpec((tile_b, D), lambda i: (i, 0)),
            # Weights / biases: full-extent blocks, constant index_map
            # -> resident in VMEM across all grid steps.
            pl.BlockSpec(w1.shape, lambda i: (0, 0)),
            pl.BlockSpec(b1.shape, lambda i: (0, 0)),
            pl.BlockSpec(w2.shape, lambda i: (0, 0)),
            pl.BlockSpec(b2.shape, lambda i: (0, 0)),
            pl.BlockSpec(w3.shape, lambda i: (0, 0)),
            pl.BlockSpec(b3.shape, lambda i: (0, 0)),
        ],
        out_specs=(
            pl.BlockSpec((tile_b, 1), lambda i: (i, 0)),
            pl.BlockSpec((tile_b, 32), lambda i: (i, 0)),
        ),
        compiler_params=pltpu.CompilerParams(
            dimension_semantics=("parallel",)),
    )(x_p, w1, b1, w2, b2, w3, b3)

    if b_pad != B:
        return out_pad[:B], rep_pad[:B]
    return out_pad, rep_pad


def init_params(input_size, key):
    """Deterministic init mimicking nn.Linear's uniform(-1/sqrt(fan_in), ...)."""
    ks = jax.random.split(key, 6)

    def linear(kw, kb, fan_in, fan_out, w_shape):
        bound = 1.0 / jnp.sqrt(fan_in)
        w = jax.random.uniform(kw, w_shape, jnp.float32, -bound, bound)
        b = jax.random.uniform(kb, (1, fan_out), jnp.float32, -bound, bound)
        return w, b

    w1, b1 = linear(ks[0], ks[1], input_size, 64, (input_size, 64))
    w2, b2 = linear(ks[2], ks[3], 64, 32, (64, 32))
    # fc3 weight stored as (1, 32) for the VPU-reduction path.
    w3, b3 = linear(ks[4], ks[5], 32, 1, (1, 32))
    return {"w1": w1, "b1": b1, "w2": w2, "b2": b2, "w3": w3, "b3": b3}


def reference_forward(x, p):
    """Pure-JAX f32 reference (same layout conventions as the kernel)."""
    h1 = jnp.maximum(
        jnp.dot(x, p["w1"], preferred_element_type=jnp.float32) + p["b1"], 0.0)
    rep = jnp.maximum(
        jnp.dot(h1, p["w2"], preferred_element_type=jnp.float32) + p["b2"], 0.0)
    out = jnp.sum(rep * p["w3"], axis=-1, keepdims=True) + p["b3"]
    return out, rep


if __name__ == "__main__":
    key = jax.random.PRNGKey(0)
    k_x, k_p = jax.random.split(key)

    batch, input_size = 8, 16
    x = jax.random.normal(k_x, (batch, input_size), jnp.float32)
    params = init_params(input_size, k_p)

    out, rep = mlp_complexity_forward(x, params)
    out, rep = jax.block_until_ready((out, rep))

    ref_out, ref_rep = reference_forward(x, params)
    assert out.shape == (batch, 1) and rep.shape == (batch, 32)
    assert jnp.allclose(rep, ref_rep, atol=2e-3, rtol=2e-3)
    assert jnp.allclose(out, ref_out, atol=2e-3, rtol=2e-3)

    print("KERNEL_OK")
</pallas_src>

<mosaic_0001>
module attributes {stable_mosaic.version = 11 : i64} {
  func.func @mlp_kernel(%arg0: i32, %arg1: memref<8x16xf32, #tpu.memory_space<vmem>>, %arg2: memref<16x64xf32, #tpu.memory_space<vmem>>, %arg3: memref<1x64xf32, #tpu.memory_space<vmem>>, %arg4: memref<64x32xf32, #tpu.memory_space<vmem>>, %arg5: memref<1x32xf32, #tpu.memory_space<vmem>>, %arg6: memref<1x32xf32, #tpu.memory_space<vmem>>, %arg7: memref<1x1xf32, #tpu.memory_space<vmem>>, %arg8: memref<8x1xf32, #tpu.memory_space<vmem>>, %arg9: memref<8x32xf32, #tpu.memory_space<vmem>>) attributes {dimension_semantics = [#tpu.dimension_semantics<parallel>], iteration_bounds = array<i64: 1>, scalar_prefetch = 0 : i64, scratch_operands = 0 : i64, tpu.core_type = #tpu.core_type<tc>, window_params = [{transform_indices = @transform_0, window_bounds = array<i64: 8, 16>}, {pipeline_mode = #tpu.pipeline_mode<synchronous>, transform_indices = @transform_1, window_bounds = array<i64: 16, 64>}, {pipeline_mode = #tpu.pipeline_mode<synchronous>, transform_indices = @transform_2, window_bounds = array<i64: 1, 64>}, {pipeline_mode = #tpu.pipeline_mode<synchronous>, transform_indices = @transform_3, window_bounds = array<i64: 64, 32>}, {pipeline_mode = #tpu.pipeline_mode<synchronous>, transform_indices = @transform_4, window_bounds = array<i64: 1, 32>}, {pipeline_mode = #tpu.pipeline_mode<synchronous>, transform_indices = @transform_5, window_bounds = array<i64: 1, 32>}, {pipeline_mode = #tpu.pipeline_mode<synchronous>, transform_indices = @transform_6, window_bounds = array<i64: 1, 1>}, {transform_indices = @transform_7, window_bounds = array<i64: 8, 1>}, {transform_indices = @transform_8, window_bounds = array<i64: 8, 32>}]} {
    %c0 = arith.constant 0 : index
    %c0_0 = arith.constant 0 : index
    %0 = vector.load %arg1[%c0, %c0_0] : memref<8x16xf32, #tpu.memory_space<vmem>>, vector<8x16xf32>
    %c0_1 = arith.constant 0 : index
    %c0_2 = arith.constant 0 : index
    %1 = vector.load %arg2[%c0_1, %c0_2] : memref<16x64xf32, #tpu.memory_space<vmem>>, vector<16x64xf32>
    %cst = arith.constant dense<0.000000e+00> : vector<8x64xf32>
    %2 = tpu.matmul %0, %1, %cst {dimension_numbers = #tpu.dot_dimension_numbers<[1], [0], [0], [1], [0, 0, 1, 1], [], []>} : vector<8x16xf32>, vector<16x64xf32>, vector<8x64xf32> -> vector<8x64xf32>
    %c0_3 = arith.constant 0 : index
    %c0_4 = arith.constant 0 : index
    %3 = vector.load %arg3[%c0_3, %c0_4] : memref<1x64xf32, #tpu.memory_space<vmem>>, vector<1x64xf32>
    %4 = vector.broadcast %3 : vector<1x64xf32> to vector<8x64xf32>
    %5 = arith.addf %2, %4 : vector<8x64xf32>
    %cst_5 = arith.constant 0.000000e+00 : f32
    %6 = vector.broadcast %cst_5 : f32 to vector<8x64xf32>
    %7 = arith.maximumf %5, %6 : vector<8x64xf32>
    %c0_6 = arith.constant 0 : index
    %c0_7 = arith.constant 0 : index
    %8 = vector.load %arg4[%c0_6, %c0_7] : memref<64x32xf32, #tpu.memory_space<vmem>>, vector<64x32xf32>
    %cst_8 = arith.constant dense<0.000000e+00> : vector<8x32xf32>
    %9 = tpu.matmul %7, %8, %cst_8 {dimension_numbers = #tpu.dot_dimension_numbers<[1], [0], [0], [1], [0, 0, 1, 1], [], []>} : vector<8x64xf32>, vector<64x32xf32>, vector<8x32xf32> -> vector<8x32xf32>
    %c0_9 = arith.constant 0 : index
    %c0_10 = arith.constant 0 : index
    %10 = vector.load %arg5[%c0_9, %c0_10] : memref<1x32xf32, #tpu.memory_space<vmem>>, vector<1x32xf32>
    %11 = vector.broadcast %10 : vector<1x32xf32> to vector<8x32xf32>
    %12 = arith.addf %9, %11 : vector<8x32xf32>
    %cst_11 = arith.constant 0.000000e+00 : f32
    %13 = vector.broadcast %cst_11 : f32 to vector<8x32xf32>
    %14 = arith.maximumf %12, %13 : vector<8x32xf32>
    %c0_12 = arith.constant 0 : index
    %c0_13 = arith.constant 0 : index
    %15 = vector.load %arg9[%c0_12, %c0_13] : memref<8x32xf32, #tpu.memory_space<vmem>>, vector<8x32xf32>
    tpu.vector_store %arg9[%c0_12, %c0_13], %14 {strides = array<i32>} : memref<8x32xf32, #tpu.memory_space<vmem>>, vector<8x32xf32>,
    %c0_14 = arith.constant 0 : index
    %c0_15 = arith.constant 0 : index
    %16 = vector.load %arg6[%c0_14, %c0_15] : memref<1x32xf32, #tpu.memory_space<vmem>>, vector<1x32xf32>
    %17 = vector.broadcast %16 : vector<1x32xf32> to vector<8x32xf32>
    %18 = arith.mulf %14, %17 : vector<8x32xf32>
    %cst_16 = arith.constant dense<0.000000e+00> : vector<8xf32>
    %19 = vector.multi_reduction <add>, %18, %cst_16 [1] : vector<8x32xf32> to vector<8xf32>
    %20 = vector.shape_cast %19 : vector<8xf32> to vector<8x1xf32>
    %c0_17 = arith.constant 0 : index
    %c0_18 = arith.constant 0 : index
    %21 = vector.load %arg7[%c0_17, %c0_18] : memref<1x1xf32, #tpu.memory_space<vmem>>, vector<1x1xf32>
    %22 = vector.broadcast %21 : vector<1x1xf32> to vector<8x1xf32>
    %23 = arith.addf %20, %22 : vector<8x1xf32>
    %c0_19 = arith.constant 0 : index
    %c0_20 = arith.constant 0 : index
    %24 = vector.load %arg8[%c0_19, %c0_20] : memref<8x1xf32, #tpu.memory_space<vmem>>, vector<8x1xf32>
    tpu.vector_store %arg8[%c0_19, %c0_20], %23 {strides = array<i32>} : memref<8x1xf32, #tpu.memory_space<vmem>>, vector<8x1xf32>,
    return
  }
  func.func @transform_0(%arg0: i32) -> (i32, i32) {
    %c0_i32 = arith.constant 0 : i32
    %c0_i32_0 = arith.constant 0 : i32
    return %arg0, %c0_i32 : i32, i32
  }
  func.func @transform_1(%arg0: i32) -> (i32, i32) {
    %c0_i32 = arith.constant 0 : i32
    %c0_i32_0 = arith.constant 0 : i32
    %c0_i32_1 = arith.constant 0 : i32
    return %c0_i32, %c0_i32_0 : i32, i32
  }
  func.func @transform_2(%arg0: i32) -> (i32, i32) {
    %c0_i32 = arith.constant 0 : i32
    %c0_i32_0 = arith.constant 0 : i32
    %c0_i32_1 = arith.constant 0 : i32
    return %c0_i32, %c0_i32_0 : i32, i32
  }
  func.func @transform_3(%arg0: i32) -> (i32, i32) {
    %c0_i32 = arith.constant 0 : i32
    %c0_i32_0 = arith.constant 0 : i32
    %c0_i32_1 = arith.constant 0 : i32
    return %c0_i32, %c0_i32_0 : i32, i32
  }
  func.func @transform_4(%arg0: i32) -> (i32, i32) {
    %c0_i32 = arith.constant 0 : i32
    %c0_i32_0 = arith.constant 0 : i32
    %c0_i32_1 = arith.constant 0 : i32
    return %c0_i32, %c0_i32_0 : i32, i32
  }
  func.func @transform_5(%arg0: i32) -> (i32, i32) {
    %c0_i32 = arith.constant 0 : i32
    %c0_i32_0 = arith.constant 0 : i32
    %c0_i32_1 = arith.constant 0 : i32
    return %c0_i32, %c0_i32_0 : i32, i32
  }
  func.func @transform_6(%arg0: i32) -> (i32, i32) {
    %c0_i32 = arith.constant 0 : i32
    %c0_i32_0 = arith.constant 0 : i32
    %c0_i32_1 = arith.constant 0 : i32
    return %c0_i32, %c0_i32_0 : i32, i32
  }
  func.func @transform_7(%arg0: i32) -> (i32, i32) {
    %c0_i32 = arith.constant 0 : i32
    %c0_i32_0 = arith.constant 0 : i32
    return %arg0, %c0_i32 : i32, i32
  }
  func.func @transform_8(%arg0: i32) -> (i32, i32) {
    %c0_i32 = arith.constant 0 : i32
    %c0_i32_0 = arith.constant 0 : i32
    return %arg0, %c0_i32 : i32, i32
  }
}

</mosaic_0001>

<bundles_post_ra>
// kernel: tpu_custom_call.1
= control target key start
LH: loop header
LB: loop body
LE: loop exit
PB: predicated region body
PF: predicated region fallthrough
CT: control target
= control target key end

     0   :  { %s443_s0 = inlined_call_operand.vmem [shape: f32[8,16], index: 0, kind: input, shape index: {}]   ;;  %s444_s1 = inlined_call_operand.vmem [shape: f32[16,64], index: 1, kind: input, shape index: {}]   ;;  %s445_s2 = inlined_call_operand.vmem [shape: f32[1,64], index: 2, kind: input, shape index: {}]   ;;  %s446_s3 = inlined_call_operand.vmem [shape: f32[64,32], index: 3, kind: input, shape index: {}]   ;;  %s447_s4 = inlined_call_operand.vmem [shape: f32[1,32], index: 4, kind: input, shape index: {}]   ;;  %s448_s5 = inlined_call_operand.vmem [shape: f32[1,32], index: 5, kind: input, shape index: {}]   ;;  %s449_s6 = inlined_call_operand.<no memory space> [shape: f32[1,1], index: 6, kind: input, shape index: {}]   ;;  %s450_s7 = inlined_call_operand.vmem [shape: f32[8,1], index: 7, kind: output, shape index: {0}]   ;;  %s451_s8 = inlined_call_operand.hbm [shape: f32[8,32], index: 8, kind: output, shape index: {1}]  }
   0x1   :  { %v14_v0 = vstv %s449_s6 }
   0x2   :  { %15 = vst [vmem:[#allocation2] sm:$0x1] %v14_v0 }
   0x3   :  { %v32_v1 = vld [vmem:[%s444_s1] sm:$0xff]  ;;  %v33_v2 = vld [vmem:[%s444_s1 + $0x8] sm:$0xff]  ;;  %v334_v3 = vmov 0.0|0.0   ;;  %vm335_vm0 = vmmov 0   ;;  %v336_v5 = vmov 0.0   ;;  %v118_v8 = vld [vmem:[%s446_s3 + $0x10] sm:$0xff] }
   0x4   :  { %291 = vmatprep.subr.bf16.mxu0 %v334_v3  ;;  %v292_v4 = vpack.c.bf16 %v33_v2, %v32_v1  ;;  %269 = vmatprep.mubr.msk.f32.mxu0 %vm335_vm0, %v336_v5  ;;  %v116_v6 = vld [vmem:[%s446_s3] sm:$0xff]  ;;  %v117_v7 = vld [vmem:[%s446_s3 + $0x8] sm:$0xff]  ;;  %v119_v10 = vld [vmem:[%s446_s3 + $0x18] sm:$0xff]  ;;  %vm41_vm1 = vcmask 130048  }
   0x5   :  { %294 = vmatprep.subr.bf16.mxu1 %v334_v3  ;;  %v295_v9 = vpack.c.bf16 %v117_v7, %v116_v6  ;;  %288 = vmatprep.mubr.msk.f32.mxu1 %vm335_vm0, %v336_v5  ;;  %v31_v11 = vld [vmem:[%s443_s0] sm:$0xff] }
   0x6   :  { %293 = vmatpush3.bf16.msra.mxu0 %v292_v4 }
   0x7   :  { %16 = vsyncpa [#allocation4], 0  ;;  %296 = vmatpush3.bf16.msra.mxu1 %v295_v9  ;;  %v298_v12 = vpack.c.bf16 %v119_v10, %v118_v8  ;;  %v120_v13 = vld [vmem:[%s446_s3 + $0x20] sm:$0xff]  ;;  %v121_v14 = vld [vmem:[%s446_s3 + $0x28] sm:$0xff]  ;;  %vm131_vm2 = vcmask 523264   ;;  %vm206_vm3 = vcmask 261120  }
   0x8   :  { %297 = vmatprep.subr.bf16.mxu1 %v334_v3  ;;  %v301_v15 = vpack.c.bf16 %v121_v14, %v120_v13  ;;  %v122_v16 = vld [vmem:[%s446_s3 + $0x30] sm:$0xff]  ;;  %v123_v17 = vld [vmem:[%s446_s3 + $0x38] sm:$0xff]  ;;  %v247_v19 = vld [vmem:[%s445_s2] ss:$0 sm:$0xff]  ;;  %s337_s2 = smov [#allocation3]  }
   0x9   :  { %270 = vmatmul.mubr.msk.f32.vlgmr.msra.gmra.mrb[0].mxu0 %vm41_vm1, %v31_v11  ;;  %v304_v18 = vpack.c.bf16 %v123_v17, %v122_v16  ;;  %v249_v24 = vld [vmem:[%s447_s4] ss:$0 sm:$0xff]  ;;  %s237_s9 = sshll.u32 %s337_s2, 4  ;;  %s238_s9 = int_to_ptr.vmem [resolvable:$true] %s237_s9 }
   0xa   :  { %v251_v28 = vld [vmem:[%s448_s5] ss:$0 sm:$0xff]  ;;  %s310_s10 = scalar_lea.vmem %s238_s9, 128  ;;  %p315_p1 = scmp.lt.s32.totalorder %s238_s9, %s238_s9 }
   0xb   :  { %299 = vmatpush3.bf16.msra.mxu1 %v298_v12  ;;  %p311_p0 = scmp.ne.s32.totalorder %s238_s9, %s310_s10  ;;  %p316_p2 = scmp.lt.s32.totalorder %s310_s10, %s310_s10 }
   0xc   :  { %300 = vmatprep.subr.bf16.mxu1 %v334_v3 }
   0xd   :  { %p317_p3 = por %p316_p2, %p315_p1 }
   0xf   :  { %302 = vmatpush3.bf16.msra.mxu1 %v301_v15  ;;  %p318_p4 = pnand %p317_p3, %p311_p0 }
  0x10   :  { %303 = vmatprep.subr.bf16.mxu1 %v334_v3 }
  0x13   :  { %305 = vmatpush3.bf16.msra.mxu1 %v304_v18 }
  0xdc   :  { %v111_v20 = vpop.f32.mrb[0].mxu0 }
  0xdd   :  { %v112_v21 = vadd.f32 %v247_v19, %v111_v20  ;;  %v271_v22 = vpop.f32.mrb[1].mxu0 }
  0xdf   :  { %v115_v23 = vmax.f32 %v112_v21, 0.0 }
  0xe1   :  { %289 = vmatmul.mubr.msk.f32.vlgmr.msra.gmra.mrb[0].mxu1 %vm131_vm2, %v115_v23 }
 0x1b4   :  { %v201_v25 = vpop.f32.mrb[0].mxu1 }
 0x1b5   :  { %v202_v26 = vadd.f32 %v249_v24, %v201_v25  ;;  %v290_v27 = vpop.f32.mrb[1].mxu1 }
 0x1b7   :  { %v205_v29 = vmax.f32 %v202_v26, 0.0 }
 0x1b9   :  { %v215_v30 = vmul.f32 %v251_v28, %v205_v29  ;;  %207 = vst.msk [vmem:[#allocation3] sm:$0xff] %vm206_vm3, %v205_v29 }
 0x1bb   :  { %v216_v31 = vsel %vm206_vm3, %v215_v30, 0.0 }
 0x1bc   :  { %217 = vadd.xlane.f32.xlu0 %v216_v31 }
 0x1bd   :  { %321 = shalt.err (!%p318_p4)
}
 0x1be   :  { %s322_s12 = scalar_lea.hbm %s451_s8, 128 }
 0x1bf   :  { %p323_p5 = scmp.ne.s32.totalorder %s451_s8, %s322_s12  ;;  %p326_p6 = scmp.lt.u32.totalorder %s322_s12, %s451_s8 }
 0x1c1   :  { %p328_p7 = pnand %p326_p6, %p323_p5 }
 0x1c3   :  { %331 = shalt.err (!%p328_p7)
}
 0x1c4   :  { %240 = dma.vmem_to_hbm [thread:$0]  %s238_s9, 128, %s451_s8, [#allocation4]   ;;  %v252_v32 = vld [vmem:[#allocation2] ss:$0 sm:$0xff]  ;;  %vm227_vm4 = vcmask 7168  }
 0x249   :  { %v218_v33 = vpop.xlane.xlu0 %217 }
 0x24a   :  { %v226_v34 = vadd.f32 %v252_v32, %v218_v33 }
 0x24c   :  { %228 = vst.msk [vmem:[%s450_s7] sm:$0xff] %vm227_vm4, %v226_v34 }
 0x24d   :  { %332 = dma.done.wait [#allocation4], 128  }
 0x24e   :  { %333 = vsyncadd [#allocation4], 4294967168 }
 0x24f   :  { %246 = vsyncpa [#allocation4], 1 }

</bundles_post_ra>
